<compile_context>
chip_gen: v7x
topology: tpu7x:2x2x1
jax: 0.10.0
libtpu: 0.0.40
codegen_flags: <defaults>
</compile_context>

<pallas_src>
import jax
import jax.numpy as jnp
from jax.experimental import pallas as pl
from jax.experimental.pallas import tpu as pltpu

INPUT_SIZE = 512
H1 = 256
H2 = 64
NUM_CLASSES = 4


def _round_up(n: int, m: int) -> int:
    return ((n + m - 1) // m) * m


def mlp_kernel(x_ref, w1_ref, b1_ref, w2_ref, b2_ref, w3_ref, b3_ref, o_ref):
    # Load the batch tile and cast to bf16 for the MXU (accumulate in f32).
    x = x_ref[...].astype(jnp.bfloat16)

    # fc1 + ReLU   (bias add / ReLU in f32)
    h1 = jnp.dot(x, w1_ref[...], preferred_element_type=jnp.float32) + b1_ref[...]
    h1 = jnp.maximum(h1, 0.0).astype(jnp.bfloat16)

    # fc2 + ReLU
    h2 = jnp.dot(h1, w2_ref[...], preferred_element_type=jnp.float32) + b2_ref[...]
    h2 = jnp.maximum(h2, 0.0).astype(jnp.bfloat16)

    # fc3
    logits = jnp.dot(h2, w3_ref[...], preferred_element_type=jnp.float32) + b3_ref[...]

    # softmax over the class axis (PyTorch dim=1 == last axis here), numerically stable.
    m = jnp.max(logits, axis=-1, keepdims=True)
    e = jnp.exp(logits - m)
    inv_denom = pl.reciprocal(jnp.sum(e, axis=-1, keepdims=True), approx=True)
    o_ref[...] = (e * inv_denom).astype(o_ref.dtype)


def mlp_forward(x, params, *, batch_tile: int = 512):
    """Fused MLP forward. x: (B, 512) f32. Returns (B, 4) f32 softmax probabilities."""
    w1, b1, w2, b2, w3, b3 = params
    B = x.shape[0]

    # Batch tile: multiple of 8 (f32 sublane), capped at `batch_tile`, shrinks for tiny batches.
    TB = min(batch_tile, _round_up(B, 8))
    Bp = _round_up(B, TB)
    if Bp != B:
        x = jnp.pad(x, ((0, Bp - B), (0, 0)))

    # Weights resident in VMEM in bf16 (MXU-native, halves their footprint); biases stay f32.
    w1b = w1.astype(jnp.bfloat16)
    w2b = w2.astype(jnp.bfloat16)
    w3b = w3.astype(jnp.bfloat16)

    grid = (Bp // TB,)

    weight_bytes = 2 * (INPUT_SIZE * H1 + H1 * H2 + H2 * NUM_CLASSES)  # bf16
    bias_bytes = 4 * (H1 + H2 + NUM_CLASSES)
    cost = pl.CostEstimate(
        flops=2 * Bp * (INPUT_SIZE * H1 + H1 * H2 + H2 * NUM_CLASSES),
        transcendentals=Bp * (NUM_CLASSES + 1),
        bytes_accessed=Bp * INPUT_SIZE * 4 + Bp * NUM_CLASSES * 4 + weight_bytes + bias_bytes,
    )

    out = pl.pallas_call(
        mlp_kernel,
        out_shape=jax.ShapeDtypeStruct((Bp, NUM_CLASSES), jnp.float32),
        grid=grid,
        in_specs=[
            pl.BlockSpec((TB, INPUT_SIZE), lambda i: (i, 0)),       # x: streamed per batch tile
            pl.BlockSpec((INPUT_SIZE, H1), lambda i: (0, 0)),       # w1: VMEM-resident
            pl.BlockSpec((1, H1), lambda i: (0, 0)),                # b1
            pl.BlockSpec((H1, H2), lambda i: (0, 0)),               # w2
            pl.BlockSpec((1, H2), lambda i: (0, 0)),                # b2
            pl.BlockSpec((H2, NUM_CLASSES), lambda i: (0, 0)),      # w3
            pl.BlockSpec((1, NUM_CLASSES), lambda i: (0, 0)),       # b3
        ],
        out_specs=pl.BlockSpec((TB, NUM_CLASSES), lambda i: (i, 0)),
        compiler_params=pltpu.CompilerParams(
            dimension_semantics=("parallel",),  # shard batch tiles across TCs (v7x megacore)
        ),
        cost_estimate=cost,
    )(x, w1b, b1, w2b, b2, w3b, b3)

    return out[:B]


def init_params(key):
    """Deterministic init mimicking nn.Linear's uniform(-1/sqrt(fan_in), 1/sqrt(fan_in))."""
    keys = jax.random.split(key, 6)

    def linear(kw, kb, fan_in, fan_out):
        bound = 1.0 / jnp.sqrt(fan_in)
        # stored as (in, out) so the kernel computes x @ W
        w = jax.random.uniform(kw, (fan_in, fan_out), jnp.float32, -bound, bound)
        b = jax.random.uniform(kb, (1, fan_out), jnp.float32, -bound, bound)
        return w, b

    w1, b1 = linear(keys[0], keys[1], INPUT_SIZE, H1)
    w2, b2 = linear(keys[2], keys[3], H1, H2)
    w3, b3 = linear(keys[4], keys[5], H2, NUM_CLASSES)
    return (w1, b1, w2, b2, w3, b3)


def mlp_ref(x, params):
    """Pure-JAX f32 reference matching the PyTorch module."""
    w1, b1, w2, b2, w3, b3 = params
    h1 = jnp.maximum(x @ w1 + b1, 0.0)
    h2 = jnp.maximum(h1 @ w2 + b2, 0.0)
    logits = h2 @ w3 + b3
    return jax.nn.softmax(logits, axis=1)


if __name__ == "__main__":
    key = jax.random.PRNGKey(0)
    k_x, k_p = jax.random.split(key)

    B = 64  # small batch (not a multiple of the default 512 tile -> exercises TB adaptation)
    x = jax.random.normal(k_x, (B, INPUT_SIZE), jnp.float32)
    params = init_params(k_p)

    out = mlp_forward(x, params)
    out = jax.block_until_ready(out)

    ref = mlp_ref(x, params)
    assert out.shape == (B, NUM_CLASSES)
    # bf16 matmul inputs + approx reciprocal: compare against the f32 reference with a
    # correspondingly looser tolerance (test artifact, not a kernel bug).
    assert jnp.allclose(out, ref, atol=2e-2, rtol=2e-2), "mismatch vs pure-JAX reference"
    # rows of a softmax sum to ~1 (approx reciprocal changes the last few ULPs)
    assert jnp.allclose(jnp.sum(out, axis=1), jnp.ones((B,)), atol=1e-2)

    print("KERNEL_OK")
</pallas_src>

<mosaic_0001>
module attributes {stable_mosaic.version = 11 : i64} {
  func.func @mlp_kernel(%arg0: i32, %arg1: memref<64x512xf32, #tpu.memory_space<vmem>>, %arg2: memref<512x256xbf16, #tpu.memory_space<vmem>>, %arg3: memref<1x256xf32, #tpu.memory_space<vmem>>, %arg4: memref<256x64xbf16, #tpu.memory_space<vmem>>, %arg5: memref<1x64xf32, #tpu.memory_space<vmem>>, %arg6: memref<64x4xbf16, #tpu.memory_space<vmem>>, %arg7: memref<1x4xf32, #tpu.memory_space<vmem>>, %arg8: memref<64x4xf32, #tpu.memory_space<vmem>>) attributes {dimension_semantics = [#tpu.dimension_semantics<parallel>], iteration_bounds = array<i64: 1>, scalar_prefetch = 0 : i64, scratch_operands = 0 : i64, tpu.core_type = #tpu.core_type<tc>, window_params = [{transform_indices = @transform_0, window_bounds = array<i64: 64, 512>}, {pipeline_mode = #tpu.pipeline_mode<synchronous>, transform_indices = @transform_1, window_bounds = array<i64: 512, 256>}, {pipeline_mode = #tpu.pipeline_mode<synchronous>, transform_indices = @transform_2, window_bounds = array<i64: 1, 256>}, {pipeline_mode = #tpu.pipeline_mode<synchronous>, transform_indices = @transform_3, window_bounds = array<i64: 256, 64>}, {pipeline_mode = #tpu.pipeline_mode<synchronous>, transform_indices = @transform_4, window_bounds = array<i64: 1, 64>}, {pipeline_mode = #tpu.pipeline_mode<synchronous>, transform_indices = @transform_5, window_bounds = array<i64: 64, 4>}, {pipeline_mode = #tpu.pipeline_mode<synchronous>, transform_indices = @transform_6, window_bounds = array<i64: 1, 4>}, {transform_indices = @transform_7, window_bounds = array<i64: 64, 4>}]} {
    %c0 = arith.constant 0 : index
    %c0_0 = arith.constant 0 : index
    %0 = vector.load %arg1[%c0, %c0_0] : memref<64x512xf32, #tpu.memory_space<vmem>>, vector<64x512xf32>
    %1 = arith.truncf %0 : vector<64x512xf32> to vector<64x512xbf16>
    %c0_1 = arith.constant 0 : index
    %c0_2 = arith.constant 0 : index
    %2 = vector.load %arg2[%c0_1, %c0_2] : memref<512x256xbf16, #tpu.memory_space<vmem>>, vector<512x256xbf16>
    %cst = arith.constant dense<0.000000e+00> : vector<64x256xf32>
    %3 = tpu.matmul %1, %2, %cst {dimension_numbers = #tpu.dot_dimension_numbers<[1], [0], [0], [1], [0, 0, 1, 1], [], []>} : vector<64x512xbf16>, vector<512x256xbf16>, vector<64x256xf32> -> vector<64x256xf32>
    %c0_3 = arith.constant 0 : index
    %c0_4 = arith.constant 0 : index
    %4 = vector.load %arg3[%c0_3, %c0_4] : memref<1x256xf32, #tpu.memory_space<vmem>>, vector<1x256xf32>
    %5 = vector.broadcast %4 : vector<1x256xf32> to vector<64x256xf32>
    %6 = arith.addf %3, %5 : vector<64x256xf32>
    %cst_5 = arith.constant 0.000000e+00 : f32
    %7 = vector.broadcast %cst_5 : f32 to vector<64x256xf32>
    %8 = arith.maximumf %6, %7 : vector<64x256xf32>
    %9 = arith.truncf %8 : vector<64x256xf32> to vector<64x256xbf16>
    %c0_6 = arith.constant 0 : index
    %c0_7 = arith.constant 0 : index
    %10 = vector.load %arg4[%c0_6, %c0_7] : memref<256x64xbf16, #tpu.memory_space<vmem>>, vector<256x64xbf16>
    %cst_8 = arith.constant dense<0.000000e+00> : vector<64x64xf32>
    %11 = tpu.matmul %9, %10, %cst_8 {dimension_numbers = #tpu.dot_dimension_numbers<[1], [0], [0], [1], [0, 0, 1, 1], [], []>} : vector<64x256xbf16>, vector<256x64xbf16>, vector<64x64xf32> -> vector<64x64xf32>
    %c0_9 = arith.constant 0 : index
    %c0_10 = arith.constant 0 : index
    %12 = vector.load %arg5[%c0_9, %c0_10] : memref<1x64xf32, #tpu.memory_space<vmem>>, vector<1x64xf32>
    %13 = vector.broadcast %12 : vector<1x64xf32> to vector<64x64xf32>
    %14 = arith.addf %11, %13 : vector<64x64xf32>
    %cst_11 = arith.constant 0.000000e+00 : f32
    %15 = vector.broadcast %cst_11 : f32 to vector<64x64xf32>
    %16 = arith.maximumf %14, %15 : vector<64x64xf32>
    %17 = arith.truncf %16 : vector<64x64xf32> to vector<64x64xbf16>
    %c0_12 = arith.constant 0 : index
    %c0_13 = arith.constant 0 : index
    %18 = vector.load %arg6[%c0_12, %c0_13] : memref<64x4xbf16, #tpu.memory_space<vmem>>, vector<64x4xbf16>
    %cst_14 = arith.constant dense<0.000000e+00> : vector<64x4xf32>
    %19 = tpu.matmul %17, %18, %cst_14 {dimension_numbers = #tpu.dot_dimension_numbers<[1], [0], [0], [1], [0, 0, 1, 1], [], []>} : vector<64x64xbf16>, vector<64x4xbf16>, vector<64x4xf32> -> vector<64x4xf32>
    %c0_15 = arith.constant 0 : index
    %c0_16 = arith.constant 0 : index
    %20 = vector.load %arg7[%c0_15, %c0_16] : memref<1x4xf32, #tpu.memory_space<vmem>>, vector<1x4xf32>
    %21 = vector.broadcast %20 : vector<1x4xf32> to vector<64x4xf32>
    %22 = arith.addf %19, %21 : vector<64x4xf32>
    %cst_17 = arith.constant dense<0xFF800000> : vector<64xf32>
    %23 = vector.multi_reduction <maximumf>, %22, %cst_17 [1] : vector<64x4xf32> to vector<64xf32>
    %24 = vector.shape_cast %23 : vector<64xf32> to vector<64x1xf32>
    %25 = vector.broadcast %24 : vector<64x1xf32> to vector<64x4xf32>
    %26 = arith.subf %22, %25 : vector<64x4xf32>
    %27 = math.exp %26 : vector<64x4xf32>
    %cst_18 = arith.constant dense<0.000000e+00> : vector<64xf32>
    %28 = vector.multi_reduction <add>, %27, %cst_18 [1] : vector<64x4xf32> to vector<64xf32>
    %29 = vector.shape_cast %28 : vector<64xf32> to vector<64x1xf32>
    %30 = tpu.reciprocal %29 {approx = true} : vector<64x1xf32> -> vector<64x1xf32>
    %31 = vector.broadcast %30 : vector<64x1xf32> to vector<64x4xf32>
    %32 = arith.mulf %27, %31 : vector<64x4xf32>
    %c0_19 = arith.constant 0 : index
    %c0_20 = arith.constant 0 : index
    %33 = vector.load %arg8[%c0_19, %c0_20] : memref<64x4xf32, #tpu.memory_space<vmem>>, vector<64x4xf32>
    tpu.vector_store %arg8[%c0_19, %c0_20], %32 {strides = array<i32>} : memref<64x4xf32, #tpu.memory_space<vmem>>, vector<64x4xf32>,
    return
  }
  func.func @transform_0(%arg0: i32) -> (i32, i32) {
    %c0_i32 = arith.constant 0 : i32
    %c0_i32_0 = arith.constant 0 : i32
    return %arg0, %c0_i32 : i32, i32
  }
  func.func @transform_1(%arg0: i32) -> (i32, i32) {
    %c0_i32 = arith.constant 0 : i32
    %c0_i32_0 = arith.constant 0 : i32
    %c0_i32_1 = arith.constant 0 : i32
    return %c0_i32, %c0_i32_0 : i32, i32
  }
  func.func @transform_2(%arg0: i32) -> (i32, i32) {
    %c0_i32 = arith.constant 0 : i32
    %c0_i32_0 = arith.constant 0 : i32
    %c0_i32_1 = arith.constant 0 : i32
    return %c0_i32, %c0_i32_0 : i32, i32
  }
  func.func @transform_3(%arg0: i32) -> (i32, i32) {
    %c0_i32 = arith.constant 0 : i32
    %c0_i32_0 = arith.constant 0 : i32
    %c0_i32_1 = arith.constant 0 : i32
    return %c0_i32, %c0_i32_0 : i32, i32
  }
  func.func @transform_4(%arg0: i32) -> (i32, i32) {
    %c0_i32 = arith.constant 0 : i32
    %c0_i32_0 = arith.constant 0 : i32
    %c0_i32_1 = arith.constant 0 : i32
    return %c0_i32, %c0_i32_0 : i32, i32
  }
  func.func @transform_5(%arg0: i32) -> (i32, i32) {
    %c0_i32 = arith.constant 0 : i32
    %c0_i32_0 = arith.constant 0 : i32
    %c0_i32_1 = arith.constant 0 : i32
    return %c0_i32, %c0_i32_0 : i32, i32
  }
  func.func @transform_6(%arg0: i32) -> (i32, i32) {
    %c0_i32 = arith.constant 0 : i32
    %c0_i32_0 = arith.constant 0 : i32
    %c0_i32_1 = arith.constant 0 : i32
    return %c0_i32, %c0_i32_0 : i32, i32
  }
  func.func @transform_7(%arg0: i32) -> (i32, i32) {
    %c0_i32 = arith.constant 0 : i32
    %c0_i32_0 = arith.constant 0 : i32
    return %arg0, %c0_i32 : i32, i32
  }
}

</mosaic_0001>

<bundles_post_ra>
// kernel: tpu_custom_call.1
= control target key start
LH: loop header
LB: loop body
LE: loop exit
PB: predicated region body
PF: predicated region fallthrough
CT: control target
= control target key end

     0   :  { %12 = vsyncpa [#allocation3], 0  ;;  %s1700_s0 = inlined_call_operand.hbm [shape: f32[64,512], index: 0, kind: input, shape index: {}]   ;;  %s1701_s1 = inlined_call_operand.hbm [shape: bf16[512,256], index: 1, kind: input, shape index: {}]   ;;  %s1702_s2 = inlined_call_operand.vmem [shape: f32[1,256], index: 2, kind: input, shape index: {}]   ;;  %s1703_s3 = inlined_call_operand.vmem [shape: bf16[256,64], index: 3, kind: input, shape index: {}]   ;;  %s1704_s4 = inlined_call_operand.vmem [shape: f32[1,64], index: 4, kind: input, shape index: {}]   ;;  %s1705_s5 = inlined_call_operand.vmem [shape: bf16[64,4], index: 5, kind: input, shape index: {}]   ;;  %s1706_s6 = inlined_call_operand.vmem [shape: f32[1,4], index: 6, kind: input, shape index: {}]   ;;  %s1707_s7 = inlined_call_operand.vmem [shape: f32[64,4], index: 7, kind: output, shape index: {}]  }
   0x1   :  { %13 = vsyncpa [#allocation5], 0  ;;  %s1489_s24 = smov [#allocation2]   ;;  %s1441_s28 = scalar_lea.hbm %s1700_s0, 4096 }
   0x2   :  { %s19_s25 = sshll.u32 %s1489_s24, 4  ;;  %p1442_p0 = scmp.ne.s32.totalorder %s1700_s0, %s1441_s28  ;;  %s20_s25 = int_to_ptr.vmem [resolvable:$true] %s19_s25 }
   0x3   :  { %p1445_p1 = scmp.lt.u32.totalorder %s1441_s28, %s1700_s0 }
   0x5   :  { %p1447_p2 = pnand %p1445_p1, %p1442_p0 }
   0x7   :  { %1450 = shalt.err (!%p1447_p2)
}
   0x8   :  { %s1451_s10 = scalar_lea.vmem %s20_s25, 4096  ;;  %p1456_p4 = scmp.lt.s32.totalorder %s20_s25, %s20_s25 }
   0x9   :  { %p1452_p3 = scmp.ne.s32.totalorder %s20_s25, %s1451_s10  ;;  %p1457_p5 = scmp.lt.s32.totalorder %s1451_s10, %s1451_s10 }
   0xb   :  { %p1458_p6 = por %p1457_p5, %p1456_p4 }
   0xd   :  { %p1459_p7 = pnand %p1458_p6, %p1452_p3 }
   0xf   :  { %1462 = shalt.err (!%p1459_p7)
}
  0x10   :  { %s1490_s11 = smov 512   ;;  %s1491_s12 = smov 32  }
  0x11   :  { %25 = dma.hbm_to_vmem [thread:$0]  %s1700_s0, 4096, %s20_s25, [#allocation3], %s1490_s11, %s1490_s11, %s1491_s12  }
  0x12   :  { %s1492_s15 = smov [#allocation4]   ;;  %s1463_s19 = scalar_lea.hbm %s1701_s1, 8192 }
  0x13   :  { %s31_s16 = sshll.u32 %s1492_s15, 4  ;;  %p1464_p8 = scmp.ne.s32.totalorder %s1701_s1, %s1463_s19  ;;  %s32_s16 = int_to_ptr.vmem [resolvable:$true] %s31_s16 }
  0x14   :  { %p1467_p9 = scmp.lt.u32.totalorder %s1463_s19, %s1701_s1 }
  0x16   :  { %p1469_p10 = pnand %p1467_p9, %p1464_p8 }
  0x18   :  { %1472 = shalt.err (!%p1469_p10)
}
  0x19   :  { %s1473_s24 = scalar_lea.vmem %s32_s16, 8192  ;;  %p1478_p12 = scmp.lt.s32.totalorder %s32_s16, %s32_s16 }
  0x1a   :  { %p1474_p11 = scmp.ne.s32.totalorder %s32_s16, %s1473_s24  ;;  %p1479_p13 = scmp.lt.s32.totalorder %s1473_s24, %s1473_s24 }
  0x1c   :  { %p1480_p0 = por %p1479_p13, %p1478_p12 }
  0x1e   :  { %p1481_p1 = pnand %p1480_p0, %p1474_p11 }
  0x20   :  { %1484 = shalt.err (!%p1481_p1)
}
  0x21   :  { %s1493_s0 = smov 128   ;;  %s1494_s25 = smov 8  }
  0x22   :  { %37 = dma.hbm_to_vmem [thread:$0]  %s1701_s1, 8192, %s32_s16, [#allocation5], %s1493_s0, %s1493_s0, %s1494_s25  }
  0x23   :  { %1485 = dma.done.wait [#allocation3], 4096  }
  0x24   :  { %1486 = vsyncadd [#allocation3], 4294963200 }
  0x25   :  { %1487 = dma.done.wait [#allocation5], 8192  }
  0x26   :  { %1488 = vsyncadd [#allocation5], 4294959104  ;;  %v1293_v0 = vld [vmem:[#allocation4 + $0x4] ss:$8 sps:$4 sm:$0xff]   ;;  %v1297_v2 = vld [vmem:[#allocation4] ss:$8 sps:$4 sm:$0xff]  }
  0x27   :  { %v1295_v1 = vld [vmem:[#allocation4 + $0x104] ss:$8 sps:$4 sm:$0xff]   ;;  %499 = vmatprep.subr.bf16.mxu1 %v1293_v0  ;;  %v1298_v3 = vld [vmem:[#allocation4 + $0x100] ss:$8 sps:$4 sm:$0xff]   ;;  %v1299_v4 = vld [vmem:[#allocation4 + $0x14] ss:$8 sps:$4 sm:$0xff]  }
  0x28   :  { %572 = vmatprep.subr.bf16.mxu0 %v1295_v1  ;;  %500 = vmatpush1.bf16.msra.mxu1 %v1297_v2  ;;  %v1301_v5 = vld [vmem:[#allocation4 + $0x114] ss:$8 sps:$4 sm:$0xff]   ;;  %v1303_v6 = vld [vmem:[#allocation4 + $0x10] ss:$8 sps:$4 sm:$0xff]   ;;  %v1305_v8 = vld [vmem:[#allocation4 + $0x24] ss:$8 sps:$4 sm:$0xff]  }
  0x29   :  { %573 = vmatpush1.bf16.msra.mxu0 %v1298_v3  ;;  %501 = vmatprep.subr.bf16.mxu1 %v1299_v4  ;;  %v1304_v7 = vld [vmem:[#allocation4 + $0x110] ss:$8 sps:$4 sm:$0xff]   ;;  %v1307_v9 = vld [vmem:[#allocation4 + $0x124] ss:$8 sps:$4 sm:$0xff]   ;;  %v1309_v10 = vld [vmem:[#allocation4 + $0x20] ss:$8 sps:$4 sm:$0xff]  }
  0x2a   :  { %574 = vmatprep.subr.bf16.mxu0 %v1301_v5  ;;  %v1310_v11 = vld [vmem:[#allocation4 + $0x120] ss:$8 sps:$4 sm:$0xff]   ;;  %v1311_v12 = vld [vmem:[#allocation4 + $0x34] ss:$8 sps:$4 sm:$0xff]   ;;  %v1315_v14 = vld [vmem:[#allocation4 + $0x30] ss:$8 sps:$4 sm:$0xff]  }
  0x2b   :  { %v1313_v13 = vld [vmem:[#allocation4 + $0x134] ss:$8 sps:$4 sm:$0xff]   ;;  %v1316_v15 = vld [vmem:[#allocation4 + $0x130] ss:$8 sps:$4 sm:$0xff]   ;;  %v1317_v16 = vld [vmem:[#allocation4 + $0x44] ss:$8 sps:$4 sm:$0xff]  }
  0x2c   :  { %502 = vmatpush1.bf16.msra.mxu1 %v1303_v6  ;;  %v1319_v17 = vld [vmem:[#allocation4 + $0x144] ss:$8 sps:$4 sm:$0xff]   ;;  %v1321_v18 = vld [vmem:[#allocation4 + $0x40] ss:$8 sps:$4 sm:$0xff]   ;;  %v1323_v20 = vld [vmem:[#allocation4 + $0x54] ss:$8 sps:$4 sm:$0xff]  }
  0x2d   :  { %575 = vmatpush1.bf16.msra.mxu0 %v1304_v7  ;;  %503 = vmatprep.subr.bf16.mxu1 %v1305_v8  ;;  %v1322_v19 = vld [vmem:[#allocation4 + $0x140] ss:$8 sps:$4 sm:$0xff]   ;;  %v1325_v21 = vld [vmem:[#allocation4 + $0x154] ss:$8 sps:$4 sm:$0xff]   ;;  %v1327_v22 = vld [vmem:[#allocation4 + $0x50] ss:$8 sps:$4 sm:$0xff]  }
  0x2e   :  { %576 = vmatprep.subr.bf16.mxu0 %v1307_v9  ;;  %v1328_v23 = vld [vmem:[#allocation4 + $0x150] ss:$8 sps:$4 sm:$0xff]   ;;  %v1329_v24 = vld [vmem:[#allocation4 + $0x64] ss:$8 sps:$4 sm:$0xff]   ;;  %v1333_v26 = vld [vmem:[#allocation4 + $0x60] ss:$8 sps:$4 sm:$0xff]  }
  0x2f   :  { %v1331_v25 = vld [vmem:[#allocation4 + $0x164] ss:$8 sps:$4 sm:$0xff]   ;;  %v1334_v27 = vld [vmem:[#allocation4 + $0x160] ss:$8 sps:$4 sm:$0xff]   ;;  %v1335_v28 = vld [vmem:[#allocation4 + $0x74] ss:$8 sps:$4 sm:$0xff]  }
  0x30   :  { %504 = vmatpush1.bf16.msra.mxu1 %v1309_v10  ;;  %v1337_v29 = vld [vmem:[#allocation4 + $0x174] ss:$8 sps:$4 sm:$0xff]   ;;  %v1339_v30 = vld [vmem:[#allocation4 + $0x70] ss:$8 sps:$4 sm:$0xff]   ;;  %v1341_v32 = vld [vmem:[#allocation4 + $0x84] ss:$8 sps:$4 sm:$0xff]  }
  0x31   :  { %577 = vmatpush1.bf16.msra.mxu0 %v1310_v11  ;;  %505 = vmatprep.subr.bf16.mxu1 %v1311_v12  ;;  %v1340_v31 = vld [vmem:[#allocation4 + $0x170] ss:$8 sps:$4 sm:$0xff]   ;;  %v1343_v33 = vld [vmem:[#allocation4 + $0x184] ss:$8 sps:$4 sm:$0xff]   ;;  %v1345_v34 = vld [vmem:[#allocation4 + $0x80] ss:$8 sps:$4 sm:$0xff]  }
  0x32   :  { %578 = vmatprep.subr.bf16.mxu0 %v1313_v13  ;;  %v1346_v35 = vld [vmem:[#allocation4 + $0x180] ss:$8 sps:$4 sm:$0xff]   ;;  %v1347_v36 = vld [vmem:[#allocation4 + $0x94] ss:$8 sps:$4 sm:$0xff]   ;;  %v1351_v38 = vld [vmem:[#allocation4 + $0x90] ss:$8 sps:$4 sm:$0xff]  }
  0x33   :  { %v1349_v37 = vld [vmem:[#allocation4 + $0x194] ss:$8 sps:$4 sm:$0xff]   ;;  %v1352_v39 = vld [vmem:[#allocation4 + $0x190] ss:$8 sps:$4 sm:$0xff]   ;;  %v1353_v40 = vld [vmem:[#allocation4 + $0xa4] ss:$8 sps:$4 sm:$0xff]  }
  0x34   :  { %506 = vmatpush1.bf16.msra.mxu1 %v1315_v14  ;;  %v1355_v41 = vld [vmem:[#allocation4 + $0x1a4] ss:$8 sps:$4 sm:$0xff]   ;;  %v1357_v42 = vld [vmem:[#allocation4 + $0xa0] ss:$8 sps:$4 sm:$0xff]   ;;  %v1359_v44 = vld [vmem:[#allocation4 + $0xb4] ss:$8 sps:$4 sm:$0xff]  }
  0x35   :  { %579 = vmatpush1.bf16.msra.mxu0 %v1316_v15  ;;  %507 = vmatprep.subr.bf16.mxu1 %v1317_v16  ;;  %v1358_v43 = vld [vmem:[#allocation4 + $0x1a0] ss:$8 sps:$4 sm:$0xff]   ;;  %v1361_v45 = vld [vmem:[#allocation4 + $0x1b4] ss:$8 sps:$4 sm:$0xff]   ;;  %v1363_v50 = vld [vmem:[#allocation4 + $0xb0] ss:$8 sps:$4 sm:$0xff]  }
  0x36   :  { %580 = vmatprep.subr.bf16.mxu0 %v1319_v17  ;;  %v56_v46 = vld [vmem:[#allocation2 + $0x8] sm:$0xff]  ;;  %v58_v48 = vld [vmem:[#allocation2 + $0x18] sm:$0xff]  ;;  %v55_v6 = vld [vmem:[#allocation2] sm:$0xff]  ;;  %vm920_vm0 = vcmask 523264   ;;  %vm998_vm1 = vcmask 31744  }
  0x37   :  { %v60_v47 = vld [vmem:[#allocation2 + $0x28] sm:$0xff]  ;;  %v62_v49 = vld [vmem:[#allocation2 + $0x38] sm:$0xff]  ;;  %v59_v7 = vld [vmem:[#allocation2 + $0x20] sm:$0xff] }
  0x38   :  { %508 = vmatpush1.bf16.msra.mxu1 %v1321_v18  ;;  %v1364_v51 = vld [vmem:[#allocation4 + $0x1b0] ss:$8 sps:$4 sm:$0xff]   ;;  %v88_v52 = vpack.c.bf16 %v60_v47, %v56_v46  ;;  %v90_v53 = vpack.c.bf16 %v62_v49, %v58_v48  ;;  %v1365_v54 = vld [vmem:[#allocation4 + $0xc4] ss:$8 sps:$4 sm:$0xff]   ;;  %v1369_v56 = vld [vmem:[#allocation4 + $0xc0] ss:$8 sps:$4 sm:$0xff]   ;;  %v87_v15 = vpack.c.bf16 %v59_v7, %v55_v6 }
  0x39   :  { %581 = vmatpush1.bf16.msra.mxu0 %v1322_v19  ;;  %509 = vmatprep.subr.bf16.mxu1 %v1323_v20  ;;  %v1367_v55 = vld [vmem:[#allocation4 + $0x1c4] ss:$8 sps:$4 sm:$0xff]   ;;  %v1370_v57 = vld [vmem:[#allocation4 + $0x1c0] ss:$8 sps:$4 sm:$0xff]   ;;  %v1371_v58 = vld [vmem:[#allocation4 + $0xd4] ss:$8 sps:$4 sm:$0xff]  }
  0x3a   :  { %582 = vmatprep.subr.bf16.mxu0 %v1325_v21  ;;  %531 = vmatprep.mubr.bf16.mxu1 %v88_v52  ;;  %v1373_v59 = vld [vmem:[#allocation4 + $0x1d4] ss:$8 sps:$4 sm:$0xff]   ;;  %v1375_v60 = vld [vmem:[#allocation4 + $0xd0] ss:$8 sps:$4 sm:$0xff]   ;;  %v1377_v62 = vld [vmem:[#allocation4 + $0xe4] ss:$8 sps:$4 sm:$0xff]  }
  0x3b   :  { %604 = vmatprep.mubr.bf16.mxu0 %v90_v53  ;;  %v1376_v61 = vld [vmem:[#allocation4 + $0x1d0] ss:$8 sps:$4 sm:$0xff]   ;;  %v1379_v63 = vld [vmem:[#allocation4 + $0x1e4] ss:$8 sps:$4 sm:$0xff]   ;;  %v1381_v0 = vld [vmem:[#allocation4 + $0xe0] ss:$8 sps:$4 sm:$0xff]  }
  0x3c   :  { %510 = vmatpush1.bf16.msra.mxu1 %v1327_v22  ;;  %v1382_v1 = vld [vmem:[#allocation4 + $0x1e0] ss:$8 sps:$4 sm:$0xff]   ;;  %v1383_v2 = vld [vmem:[#allocation4 + $0xf4] ss:$8 sps:$4 sm:$0xff]   ;;  %v1387_v4 = vld [vmem:[#allocation4 + $0xf0] ss:$8 sps:$4 sm:$0xff]  }
  0x3d   :  { %583 = vmatpush1.bf16.msra.mxu0 %v1328_v23  ;;  %511 = vmatprep.subr.bf16.mxu1 %v1329_v24  ;;  %v1385_v3 = vld [vmem:[#allocation4 + $0x1f4] ss:$8 sps:$4 sm:$0xff]   ;;  %v1388_v5 = vld [vmem:[#allocation4 + $0x1f0] ss:$8 sps:$4 sm:$0xff]   ;;  %v64_v10 = vld [vmem:[#allocation2 + $0x48] sm:$0xff] }
  0x3e   :  { %584 = vmatprep.subr.bf16.mxu0 %v1331_v25  ;;  %v57_v8 = vld [vmem:[#allocation2 + $0x10] sm:$0xff]  ;;  %v68_v11 = vld [vmem:[#allocation2 + $0x68] sm:$0xff]  ;;  %v66_v12 = vld [vmem:[#allocation2 + $0x58] sm:$0xff] }
  0x3f   :  { %v61_v9 = vld [vmem:[#allocation2 + $0x30] sm:$0xff]  ;;  %v70_v13 = vld [vmem:[#allocation2 + $0x78] sm:$0xff]  ;;  %v1389_v14 = vld [vmem:[%s1703_s3 + $0x40] sm:$0xff]   ;;  %v92_v18 = vpack.c.bf16 %v68_v11, %v64_v10 }
  0x40   :  { %512 = vmatpush1.bf16.msra.mxu1 %v1333_v26  ;;  %v89_v16 = vpack.c.bf16 %v61_v9, %v57_v8  ;;  %v1390_v17 = vld [vmem:[%s1703_s3] sm:$0xff]   ;;  %v94_v19 = vpack.c.bf16 %v70_v13, %v66_v12  ;;  %v1391_v20 = vld [vmem:[%s1703_s3 + $0x48] sm:$0xff]   ;;  %v65_v23 = vld [vmem:[#allocation2 + $0x50] sm:$0xff] }
  0x41   :  { %585 = vmatpush1.bf16.msra.mxu0 %v1334_v27  ;;  %513 = vmatprep.subr.bf16.mxu1 %v1335_v28  ;;  %v63_v21 = vld [vmem:[#allocation2 + $0x40] sm:$0xff]  ;;  %v69_v24 = vld [vmem:[#allocation2 + $0x70] sm:$0xff]  ;;  %v72_v25 = vld [vmem:[#allocation2 + $0x88] sm:$0xff] }
  0x42   :  { %586 = vmatprep.subr.bf16.mxu0 %v1337_v29  ;;  %v67_v22 = vld [vmem:[#allocation2 + $0x60] sm:$0xff]  ;;  %v76_v26 = vld [vmem:[#allocation2 + $0xa8] sm:$0xff]  ;;  %v74_v27 = vld [vmem:[#allocation2 + $0x98] sm:$0xff] }
  0x43   :  { %v78_v28 = vld [vmem:[#allocation2 + $0xb8] sm:$0xff]  ;;  %v1392_v29 = vld [vmem:[%s1703_s3 + $0x8] sm:$0xff]   ;;  %v1397_v46 = vld [vmem:[%s1703_s3 + $0x60] sm:$0xff]  }
  0x44   :  { %514 = vmatpush1.bf16.msra.mxu1 %v1339_v30  ;;  %v1393_v30 = vld [vmem:[%s1703_s3 + $0x50] sm:$0xff]   ;;  %v79_v52 = vld [vmem:[#allocation2 + $0xc0] sm:$0xff] }
  0x45   :  { %587 = vmatpush1.bf16.msra.mxu0 %v1340_v31  ;;  %515 = vmatprep.subr.bf16.mxu1 %v1341_v32  ;;  %v91_v31 = vpack.c.bf16 %v67_v22, %v63_v21  ;;  %v93_v32 = vpack.c.bf16 %v69_v24, %v65_v23  ;;  %v83_v53 = vld [vmem:[#allocation2 + $0xe0] sm:$0xff] }
  0x46   :  { %588 = vmatprep.subr.bf16.mxu0 %v1343_v33  ;;  %v96_v33 = vpack.c.bf16 %v76_v26, %v72_v25 }
  0x48   :  { %516 = vmatpush1.bf16.msra.mxu1 %v1345_v34  ;;  %v98_v34 = vpack.c.bf16 %v78_v28, %v74_v27 }
  0x49   :  { %589 = vmatpush1.bf16.msra.mxu0 %v1346_v35  ;;  %517 = vmatprep.subr.bf16.mxu1 %v1347_v36  ;;  %v1394_v35 = vld [vmem:[%s1703_s3 + $0x10] sm:$0xff]   ;;  %v1395_v36 = vld [vmem:[%s1703_s3 + $0x58] sm:$0xff]  }
  0x4a   :  { %590 = vmatprep.subr.bf16.mxu0 %v1349_v37  ;;  %v71_v37 = vld [vmem:[#allocation2 + $0x80] sm:$0xff] }
  0x4c   :  { %518 = vmatpush1.bf16.msra.mxu1 %v1351_v38  ;;  %v75_v38 = vld [vmem:[#allocation2 + $0xa0] sm:$0xff] }
  0x4d   :  { %591 = vmatpush1.bf16.msra.mxu0 %v1352_v39  ;;  %519 = vmatprep.subr.bf16.mxu1 %v1353_v40  ;;  %v73_v39 = vld [vmem:[#allocation2 + $0x90] sm:$0xff]  ;;  %v95_v47 = vpack.c.bf16 %v75_v38, %v71_v37 }
  0x4e   :  { %592 = vmatprep.subr.bf16.mxu0 %v1355_v41  ;;  %v77_v40 = vld [vmem:[#allocation2 + $0xb0] sm:$0xff]  ;;  %v80_v41 = vld [vmem:[#allocation2 + $0xc8] sm:$0xff] }
  0x4f   :  { %v97_v48 = vpack.c.bf16 %v77_v40, %v73_v39 }
  0x50   :  { %520 = vmatpush1.bf16.msra.mxu1 %v1357_v42  ;;  %v84_v42 = vld [vmem:[#allocation2 + $0xe8] sm:$0xff] }
  0x51   :  { %593 = vmatpush1.bf16.msra.mxu0 %v1358_v43  ;;  %521 = vmatprep.subr.bf16.mxu1 %v1359_v44  ;;  %v82_v43 = vld [vmem:[#allocation2 + $0xd8] sm:$0xff]  ;;  %v100_v49 = vpack.c.bf16 %v84_v42, %v80_v41 }
  0x52   :  { %594 = vmatprep.subr.bf16.mxu0 %v1361_v45  ;;  %v86_v44 = vld [vmem:[#allocation2 + $0xf8] sm:$0xff] }
  0x53   :  { %v1396_v45 = vld [vmem:[%s1703_s3 + $0x18] sm:$0xff]  }
  0x54   :  { %522 = vmatpush1.bf16.msra.mxu1 %v1363_v50  ;;  %v102_v50 = vpack.c.bf16 %v86_v44, %v82_v43 }
  0x55   :  { %595 = vmatpush1.bf16.msra.mxu0 %v1364_v51  ;;  %523 = vmatprep.subr.bf16.mxu1 %v1365_v54  ;;  %v1398_v51 = vld [vmem:[%s1703_s3 + $0x20] sm:$0xff]   ;;  %v81_v54 = vld [vmem:[#allocation2 + $0xd0] sm:$0xff] }
  0x56   :  { %596 = vmatprep.subr.bf16.mxu0 %v1367_v55  ;;  %v85_v55 = vld [vmem:[#allocation2 + $0xf0] sm:$0xff] }
  0x58   :  { %524 = vmatpush1.bf16.msra.mxu1 %v1369_v56  ;;  %v99_v56 = vpack.c.bf16 %v83_v53, %v79_v52 }
  0x59   :  { %597 = vmatpush1.bf16.msra.mxu0 %v1370_v57  ;;  %525 = vmatprep.subr.bf16.mxu1 %v1371_v58  ;;  %v101_v57 = vpack.c.bf16 %v85_v55, %v81_v54  ;;  %v1399_v58 = vld [vmem:[%s1703_s3 + $0x68] sm:$0xff]  }
  0x5a   :  { %598 = vmatprep.subr.bf16.mxu0 %v1373_v59  ;;  %v1400_v59 = vld [vmem:[%s1703_s3 + $0x28] sm:$0xff]  }
  0x5c   :  { %526 = vmatpush1.bf16.msra.mxu1 %v1375_v60  ;;  %v1401_v60 = vld [vmem:[%s1703_s3 + $0x70] sm:$0xff]  }
  0x5d   :  { %599 = vmatpush1.bf16.msra.mxu0 %v1376_v61  ;;  %527 = vmatprep.subr.bf16.mxu1 %v1377_v62  ;;  %v1402_v61 = vld [vmem:[%s1703_s3 + $0x30] sm:$0xff]   ;;  %v1403_v62 = vld [vmem:[%s1703_s3 + $0x78] sm:$0xff]  }
  0x5e   :  { %600 = vmatprep.subr.bf16.mxu0 %v1379_v63  ;;  %v1404_v63 = vld [vmem:[%s1703_s3 + $0x38] sm:$0xff]  }
  0x60   :  { %528 = vmatpush1.bf16.msra.mxu1 %v1381_v0  ;;  %v1405_v0 = vld [vmem:[%s1705_s5] sm:$0xff]  }
  0x61   :  { %601 = vmatpush1.bf16.msra.mxu0 %v1382_v1  ;;  %529 = vmatprep.subr.bf16.mxu1 %v1383_v2  ;;  %v169_v1 = vlaneseq }
  0x62   :  { %602 = vmatprep.subr.bf16.mxu0 %v1385_v3 }
  0x63   :  { %v170_v2 = vshrl.u32 %v169_v1, 7 }
  0x64   :  { %530 = vmatpush1.bf16.msra.mxu1 %v1387_v4  ;;  %v167_v4 = vld [vmem:[%s1702_s2] sm:$0x3] }
  0x65   :  { %603 = vmatpush1.bf16.msra.mxu0 %v1388_v5  ;;  %1239 = vmatprep.subr.bf16.mxu1 %v1405_v0  ;;  %v171_v3 = vsub.s32 0, %v170_v2  ;;  %v175_v5 = vsub.s32 1, %v170_v2 }
  0x66   :  { %1191 = vmatprep.subr.bf16.mxu0 %v1389_v14 }
  0x67   :  { %532 = vmatmul.mubr.bf16.vlgmr.msra.gmra.mrb[0].mxu1 %v87_v15  ;;  %v1613_v6 = vrot.slane %v167_v4, %v171_v3  ;;  %v1615_v7 = vrot.slane %v167_v4, %v175_v5 }
  0x68   :  { %605 = vmatmul.mubr.bf16.vlgmr.msra.gmra.mrb[0].mxu0 %v89_v16  ;;  %541 = vmatprep.mubr.bf16.mxu1 %v92_v18 }
  0x69   :  { %614 = vmatprep.mubr.bf16.mxu0 %v94_v19  ;;  %1192 = vmatpush3.bf16.msra.mxu0 %v1390_v17 }
  0x6a   :  { %1193 = vmatprep.subr.bf16.mxu0 %v1391_v20  ;;  %1240 = vmatpush3.bf16.msra.mxu1 %v1405_v0 }
  0x6d   :  { %1194 = vmatpush3.bf16.msra.mxu0 %v1392_v29 }
  0x6e   :  { %1195 = vmatprep.subr.bf16.mxu0 %v1393_v30 }
  0x6f   :  { %542 = vmatmul.mubr.bf16.gmra.mrb[4].mxu1 %v91_v31 }
  0x70   :  { %615 = vmatmul.mubr.bf16.gmra.mrb[4].mxu0 %v93_v32  ;;  %551 = vmatprep.mubr.bf16.mxu1 %v96_v33 }
  0x71   :  { %624 = vmatprep.mubr.bf16.mxu0 %v98_v34  ;;  %1196 = vmatpush3.bf16.msra.mxu0 %v1394_v35 }
  0x72   :  { %1197 = vmatprep.subr.bf16.mxu0 %v1395_v36 }
  0x75   :  { %1198 = vmatpush3.bf16.msra.mxu0 %v1396_v45 }
  0x76   :  { %1199 = vmatprep.subr.bf16.mxu0 %v1397_v46 }
  0x77   :  { %552 = vmatmul.mubr.bf16.gmra.mrb[8].mxu1 %v95_v47 }
  0x78   :  { %625 = vmatmul.mubr.bf16.gmra.mrb[8].mxu0 %v97_v48  ;;  %561 = vmatprep.mubr.bf16.mxu1 %v100_v49 }
  0x79   :  { %634 = vmatprep.mubr.bf16.mxu0 %v102_v50  ;;  %1200 = vmatpush3.bf16.msra.mxu0 %v1398_v51 }
  0x7a   :  { %1201 = vmatprep.subr.bf16.mxu0 %v1399_v58 }
  0x7d   :  { %1202 = vmatpush3.bf16.msra.mxu0 %v1400_v59 }
  0x7e   :  { %1203 = vmatprep.subr.bf16.mxu0 %v1401_v60 }
  0x7f   :  { %562 = vmatmul.mubr.bf16.gmra.mrb[12].mxu1 %v99_v56 }
  0x80   :  { %635 = vmatmul.mubr.bf16.gmra.mrb[12].mxu0 %v101_v57 }
  0x81   :  { %1204 = vmatpush3.bf16.msra.mxu0 %v1402_v61 }
  0x82   :  { %1205 = vmatprep.subr.bf16.mxu0 %v1403_v62 }
  0x85   :  { %1206 = vmatpush3.bf16.msra.mxu0 %v1404_v63 }
 0x13a   :  { %v533_v8 = vpop.f32.mrb[0].mxu1 }
 0x13b   :  { %v606_v9 = vpop.f32.mrb[0].mxu0  ;;  %v534_v10 = vadd.f32 %v533_v8, %v1613_v6  ;;  %v535_v11 = vpop.f32.mrb[1].mxu1 }
 0x13c   :  { %v608_v12 = vpop.f32.mrb[1].mxu0  ;;  %v536_v13 = vadd.f32 %v535_v11, %v1615_v7  ;;  %v537_v14 = vpop.f32.mrb[2].mxu1 }
 0x13d   :  { %v610_v15 = vpop.f32.mrb[2].mxu0  ;;  %v607_v16 = vadd.f32 %v606_v9, %v534_v10  ;;  %v538_v17 = vadd.f32 %v537_v14, %v1613_v6  ;;  %v539_v18 = vpop.f32.mrb[3].mxu1 }
 0x13e   :  { %v612_v19 = vpop.f32.mrb[3].mxu0  ;;  %v609_v20 = vadd.f32 %v608_v12, %v536_v13  ;;  %v540_v21 = vadd.f32 %v539_v18, %v1615_v7 }
 0x13f   :  { %v611_v22 = vadd.f32 %v610_v15, %v538_v17  ;;  %v645_v24 = vmax.f32 %v607_v16, 0.0 }
 0x140   :  { %v613_v23 = vadd.f32 %v612_v19, %v540_v21  ;;  %v646_v26 = vmax.f32 %v609_v20, 0.0 }
 0x141   :  { %v647_v25 = vmax.f32 %v611_v22, 0.0 }
 0x142   :  { %v648_v27 = vmax.f32 %v613_v23, 0.0  ;;  %v543_v28 = vpop.f32.mrb[4].mxu1 }
 0x143   :  { %v616_v29 = vpop.f32.mrb[4].mxu0  ;;  %v661_v30 = vpack.c.bf16 %v647_v25, %v645_v24  ;;  %v544_v31 = vadd.f32 %v543_v28, %v1613_v6  ;;  %v545_v32 = vpop.f32.mrb[5].mxu1 }
 0x144   :  { %v618_v33 = vpop.f32.mrb[5].mxu0  ;;  %v662_v34 = vpack.c.bf16 %v648_v27, %v646_v26  ;;  %v546_v35 = vadd.f32 %v545_v32, %v1615_v7  ;;  %v547_v36 = vpop.f32.mrb[6].mxu1 }
 0x145   :  { %v620_v37 = vpop.f32.mrb[6].mxu0  ;;  %v617_v38 = vadd.f32 %v616_v29, %v544_v31  ;;  %v548_v39 = vadd.f32 %v547_v36, %v1613_v6  ;;  %v549_v40 = vpop.f32.mrb[7].mxu1  ;;  %v1165_v36 = vld [vmem:[%s1704_s4] ss:$0 sm:$0xff] }
 0x146   :  { %v622_v41 = vpop.f32.mrb[7].mxu0  ;;  %v619_v42 = vadd.f32 %v618_v33, %v546_v35  ;;  %v550_v43 = vadd.f32 %v549_v40, %v1615_v7  ;;  %836 = vmatprep.mubr.bf16.mxu0 %v662_v34  ;;  %v1408_v34 = vld [vmem:[%s1705_s5 + $0x18] sm:$0xff]  }
 0x147   :  { %v621_v44 = vadd.f32 %v620_v37, %v548_v39  ;;  %837 = vmatmul.mubr.bf16.vlgmr.msra.gmra.mrb[16].mxu0 %v661_v30  ;;  %v649_v46 = vmax.f32 %v617_v38, 0.0 }
 0x148   :  { %v623_v45 = vadd.f32 %v622_v41, %v550_v43  ;;  %v650_v48 = vmax.f32 %v619_v42, 0.0 }
 0x149   :  { %v651_v47 = vmax.f32 %v621_v44, 0.0 }
 0x14a   :  { %v652_v49 = vmax.f32 %v623_v45, 0.0  ;;  %v553_v50 = vpop.f32.mrb[8].mxu1 }
 0x14b   :  { %v626_v51 = vpop.f32.mrb[8].mxu0  ;;  %v663_v52 = vpack.c.bf16 %v651_v47, %v649_v46  ;;  %v554_v53 = vadd.f32 %v553_v50, %v1613_v6  ;;  %v555_v54 = vpop.f32.mrb[9].mxu1 }
 0x14c   :  { %v628_v55 = vpop.f32.mrb[9].mxu0  ;;  %v664_v56 = vpack.c.bf16 %v652_v49, %v650_v48  ;;  %v556_v57 = vadd.f32 %v555_v54, %v1615_v7  ;;  %v557_v58 = vpop.f32.mrb[10].mxu1 }
 0x14d   :  { %v630_v59 = vpop.f32.mrb[10].mxu0  ;;  %v627_v60 = vadd.f32 %v626_v51, %v554_v53  ;;  %v558_v61 = vadd.f32 %v557_v58, %v1613_v6  ;;  %v559_v62 = vpop.f32.mrb[11].mxu1 }
 0x14e   :  { %v632_v63 = vpop.f32.mrb[11].mxu0  ;;  %v629_v0 = vadd.f32 %v628_v55, %v556_v57  ;;  %v560_v1 = vadd.f32 %v559_v62, %v1615_v7  ;;  %844 = vmatprep.mubr.bf16.mxu0 %v664_v56 }
 0x14f   :  { %v631_v2 = vadd.f32 %v630_v59, %v558_v61  ;;  %845 = vmatmul.mubr.bf16.gmra.mrb[20].mxu0 %v663_v52  ;;  %v653_v4 = vmax.f32 %v627_v60, 0.0 }
 0x150   :  { %v633_v3 = vadd.f32 %v632_v63, %v560_v1  ;;  %v654_v8 = vmax.f32 %v629_v0, 0.0 }
 0x151   :  { %v655_v5 = vmax.f32 %v631_v2, 0.0 }
 0x152   :  { %v656_v9 = vmax.f32 %v633_v3, 0.0  ;;  %v563_v10 = vpop.f32.mrb[12].mxu1 }
 0x153   :  { %v636_v11 = vpop.f32.mrb[12].mxu0  ;;  %v665_v12 = vpack.c.bf16 %v655_v5, %v653_v4  ;;  %v564_v13 = vadd.f32 %v563_v10, %v1613_v6  ;;  %v565_v14 = vpop.f32.mrb[13].mxu1 }
 0x154   :  { %v638_v15 = vpop.f32.mrb[13].mxu0  ;;  %v666_v16 = vpack.c.bf16 %v656_v9, %v654_v8  ;;  %v566_v17 = vadd.f32 %v565_v14, %v1615_v7  ;;  %v567_v18 = vpop.f32.mrb[14].mxu1 }
 0x155   :  { %v640_v19 = vpop.f32.mrb[14].mxu0  ;;  %v637_v20 = vadd.f32 %v636_v11, %v564_v13  ;;  %v568_v21 = vadd.f32 %v567_v18, %v1613_v6  ;;  %v569_v22 = vpop.f32.mrb[15].mxu1  ;;  %v1406_v6 = vld [vmem:[%s1705_s5 + $0x8] sm:$0xff]   ;;  %v1182_v18 = vld [vmem:[%s1706_s6] ss:$0 sm:$0xff] }
 0x156   :  { %v642_v23 = vpop.f32.mrb[15].mxu0  ;;  %v639_v24 = vadd.f32 %v638_v15, %v566_v17  ;;  %v570_v25 = vadd.f32 %v569_v22, %v1615_v7  ;;  %852 = vmatprep.mubr.bf16.mxu0 %v666_v16  ;;  %1241 = vmatprep.subr.bf16.mxu1 %v1406_v6  ;;  %v1407_v7 = vld [vmem:[%s1705_s5 + $0x10] sm:$0xff]  }
 0x157   :  { %v641_v26 = vadd.f32 %v640_v19, %v568_v21  ;;  %853 = vmatmul.mubr.bf16.gmra.mrb[24].mxu0 %v665_v12  ;;  %v657_v28 = vmax.f32 %v637_v20, 0.0  ;;  %1242 = vmatpush3.bf16.msra.mxu1 %v1406_v6 }
 0x158   :  { %v643_v27 = vadd.f32 %v642_v23, %v570_v25  ;;  %v658_v30 = vmax.f32 %v639_v24, 0.0  ;;  %1243 = vmatprep.subr.bf16.mxu1 %v1407_v7 }
 0x159   :  { %v659_v29 = vmax.f32 %v641_v26, 0.0 }
 0x15a   :  { %v660_v31 = vmax.f32 %v643_v27, 0.0 }
 0x15b   :  { %v667_v32 = vpack.c.bf16 %v659_v29, %v657_v28  ;;  %1244 = vmatpush3.bf16.msra.mxu1 %v1407_v7 }
 0x15c   :  { %v668_v33 = vpack.c.bf16 %v660_v31, %v658_v30  ;;  %1245 = vmatprep.subr.bf16.mxu1 %v1408_v34 }
 0x15e   :  { %860 = vmatprep.mubr.bf16.mxu0 %v668_v33 }
 0x15f   :  { %861 = vmatmul.mubr.bf16.gmra.mrb[28].mxu0 %v667_v32  ;;  %1246 = vmatpush3.bf16.msra.mxu1 %v1408_v34 }
 0x21a   :  { %v1207_v35 = vpop.f32.mrb[16].mxu0 }
 0x21b   :  { %v1208_v37 = vpop.f32.mrb[17].mxu0 }
 0x21c   :  { %v1209_v38 = vadd.f32 %v1208_v37, %v1207_v35  ;;  %v1210_v39 = vpop.f32.mrb[18].mxu0 }
 0x21d   :  { %v1211_v40 = vpop.f32.mrb[19].mxu0 }
 0x21e   :  { %v839_v41 = vadd.f32 %v1209_v38, %v1165_v36  ;;  %v1212_v42 = vadd.f32 %v1211_v40, %v1210_v39 }
 0x220   :  { %v842_v43 = vadd.f32 %v1212_v42, %v1165_v36  ;;  %v869_v44 = vmax.f32 %v839_v41, 0.0 }
 0x222   :  { %v870_v45 = vmax.f32 %v842_v43, 0.0  ;;  %v1213_v46 = vpop.f32.mrb[20].mxu0 }
 0x223   :  { %v1214_v47 = vpop.f32.mrb[21].mxu0 }
 0x224   :  { %v877_v48 = vpack.c.bf16 %v870_v45, %v869_v44  ;;  %v1215_v49 = vadd.f32 %v1214_v47, %v1213_v46  ;;  %v1216_v50 = vpop.f32.mrb[22].mxu0 }
 0x225   :  { %v1217_v51 = vpop.f32.mrb[23].mxu0 }
 0x226   :  { %v847_v52 = vadd.f32 %v1215_v49, %v1165_v36  ;;  %v1218_v53 = vadd.f32 %v1217_v51, %v1216_v50  ;;  %1247 = vmatprep.mubr.msk.bf16.mxu1 %vm920_vm0, %v877_v48 }
 0x228   :  { %v850_v54 = vadd.f32 %v1218_v53, %v1165_v36  ;;  %v871_v55 = vmax.f32 %v847_v52, 0.0 }
 0x22a   :  { %v872_v56 = vmax.f32 %v850_v54, 0.0  ;;  %v1219_v57 = vpop.f32.mrb[24].mxu0 }
 0x22b   :  { %v1220_v58 = vpop.f32.mrb[25].mxu0 }
 0x22c   :  { %v878_v59 = vpack.c.bf16 %v872_v56, %v871_v55  ;;  %v1221_v60 = vadd.f32 %v1220_v58, %v1219_v57  ;;  %v1222_v61 = vpop.f32.mrb[26].mxu0 }
 0x22d   :  { %v1223_v62 = vpop.f32.mrb[27].mxu0 }
 0x22e   :  { %v855_v63 = vadd.f32 %v1221_v60, %v1165_v36  ;;  %v1224_v0 = vadd.f32 %v1223_v62, %v1222_v61  ;;  %1248 = vmatmul.mubr.msk.bf16.vlgmr.msra.gmra.mrb[16].mxu1 %vm920_vm0, %v878_v59 }
 0x230   :  { %v858_v1 = vadd.f32 %v1224_v0, %v1165_v36  ;;  %v873_v2 = vmax.f32 %v855_v63, 0.0 }
 0x232   :  { %v874_v3 = vmax.f32 %v858_v1, 0.0  ;;  %v1225_v4 = vpop.f32.mrb[28].mxu0 }
 0x233   :  { %v1226_v5 = vpop.f32.mrb[29].mxu0 }
 0x234   :  { %v879_v8 = vpack.c.bf16 %v874_v3, %v873_v2  ;;  %v1227_v9 = vadd.f32 %v1226_v5, %v1225_v4  ;;  %v1228_v10 = vpop.f32.mrb[30].mxu0 }
 0x235   :  { %v1229_v11 = vpop.f32.mrb[31].mxu0 }
 0x236   :  { %v863_v12 = vadd.f32 %v1227_v9, %v1165_v36  ;;  %v1230_v13 = vadd.f32 %v1229_v11, %v1228_v10  ;;  %1251 = vmatprep.mubr.msk.bf16.mxu1 %vm920_vm0, %v879_v8 }
 0x238   :  { %v866_v14 = vadd.f32 %v1230_v13, %v1165_v36  ;;  %v875_v15 = vmax.f32 %v863_v12, 0.0 }
 0x23a   :  { %v876_v16 = vmax.f32 %v866_v14, 0.0 }
 0x23c   :  { %v880_v17 = vpack.c.bf16 %v876_v16, %v875_v15 }
 0x23e   :  { %1252 = vmatmul.mubr.msk.bf16.gmra.mrb[20].mxu1 %vm920_vm0, %v880_v17 }
 0x301   :  { %v1249_v19 = vpop.f32.mrb[16].mxu1 }
 0x302   :  { %v976_v20 = vadd.f32 %v1249_v19, %v1182_v18  ;;  %v967_v21 = vpop.f32.mrb[17].mxu1 }
 0x303   :  { %v968_v22 = vadd.f32 %v1182_v18, %v967_v21  ;;  %v1250_v23 = vpop.f32.mrb[18].mxu1 }
 0x304   :  { %v979_v24 = vadd.f32 %v1250_v23, %v1182_v18  ;;  %v970_v25 = vpop.f32.mrb[19].mxu1  ;;  %v1005_v26 = vsel %vm998_vm1, %v976_v20, -inf }
 0x305   :  { %v971_v27 = vadd.f32 %v1182_v18, %v970_v25  ;;  %1006 = vmax.xlane.f32.xlu1 %v1005_v26  ;;  %v999_v28 = vsel %vm998_vm1, %v968_v22, -inf }
 0x306   :  { %1000 = vmax.xlane.f32.xlu0 %v999_v28  ;;  %v1008_v29 = vsel %vm998_vm1, %v979_v24, -inf }
 0x307   :  { %v1002_v30 = vsel %vm998_vm1, %v971_v27, -inf }
 0x309   :  { %1009 = vmax.xlane.f32.xlu1 %v1008_v29 }
 0x30a   :  { %1003 = vmax.xlane.f32.xlu0 %v1002_v30 }
 0x311   :  { %v1253_v31 = vpop.f32.mrb[20].mxu1 }
 0x312   :  { %v983_v32 = vpop.f32.mrb[21].mxu1  ;;  %v992_v34 = vadd.f32 %v1253_v31, %v1182_v18 }
 0x313   :  { %v984_v33 = vadd.f32 %v1182_v18, %v983_v32  ;;  %v1254_v6 = vpop.f32.mrb[22].mxu1 }
 0x314   :  { %v986_v7 = vpop.f32.mrb[23].mxu1  ;;  %v995_v37 = vadd.f32 %v1254_v6, %v1182_v18  ;;  %v1017_v39 = vsel %vm998_vm1, %v992_v34, -inf }
 0x315   :  { %v987_v35 = vadd.f32 %v1182_v18, %v986_v7  ;;  %v1011_v36 = vsel %vm998_vm1, %v984_v33, -inf }
 0x316   :  { %1012 = vmax.xlane.f32.xlu0 %v1011_v36  ;;  %v1020_v40 = vsel %vm998_vm1, %v995_v37, -inf }
 0x317   :  { %v1014_v38 = vsel %vm998_vm1, %v987_v35, -inf }
 0x318   :  { %1015 = vmax.xlane.f32.xlu1 %v1014_v38 }
 0x31a   :  { %1018 = vmax.xlane.f32.xlu0 %v1017_v39 }
 0x31c   :  { %1021 = vmax.xlane.f32.xlu1 %v1020_v40 }
 0x392   :  { %v1007_v41 = vpop.xlane.xlu1 %1006 }
 0x393   :  { %v1025_v42 = vsub.f32 %v976_v20, %v1007_v41  ;;  %v1001_v43 = vpop.xlane.xlu0 %1000 }
 0x394   :  { %v1023_v44 = vsub.f32 %v968_v22, %v1001_v43 }
 0x395   :  { %v1035_v45 = vmul.f32 1.442695, %v1025_v42 }
 0x396   :  { %v1031_v46 = vmul.f32 1.442695, %v1023_v44  ;;  %v1010_v47 = vpop.xlane.xlu1 %1009 }
 0x397   :  { %1409 = vpow2.f32 %v1035_v45  ;;  %v1026_v48 = vsub.f32 %v979_v24, %v1010_v47  ;;  %v1004_v49 = vpop.xlane.xlu0 %1003 }
 0x398   :  { %v1024_v50 = vsub.f32 %v971_v27, %v1004_v49  ;;  %1411 = vpow2.f32 %v1031_v46 }
 0x399   :  { %v1037_v51 = vmul.f32 1.442695, %v1026_v48 }
 0x39a   :  { %v1033_v52 = vmul.f32 1.442695, %v1024_v50 }
 0x39b   :  { %1413 = vpow2.f32 %v1037_v51 }
 0x39c   :  { %1415 = vpow2.f32 %v1033_v52 }
 0x3a1   :  { %v1410_v53 = vpop.eup %1409 }
 0x3a2   :  { %v1053_v54 = vsel %vm998_vm1, %v1410_v53, 0.0  ;;  %v1412_v55 = vpop.eup %1411 }
 0x3a3   :  { %1054 = vadd.xlane.f32.xlu0 %v1053_v54  ;;  %v1013_v56 = vpop.xlane.xlu0 %1012  ;;  %v1047_v63 = vsel %vm998_vm1, %v1412_v55, 0.0 }
 0x3a4   :  { %v1027_v57 = vsub.f32 %v984_v33, %v1013_v56 }
 0x3a5   :  { %v1414_v58 = vpop.eup %1413  ;;  %v1016_v59 = vpop.xlane.xlu1 %1015 }
 0x3a6   :  { %v1039_v60 = vmul.f32 1.442695, %v1027_v57  ;;  %v1028_v61 = vsub.f32 %v987_v35, %v1016_v59  ;;  %v1056_v62 = vsel %vm998_vm1, %v1414_v58, 0.0  ;;  %v1416_v0 = vpop.eup %1415 }
 0x3a7   :  { %1057 = vadd.xlane.f32.xlu1 %v1056_v62  ;;  %1048 = vadd.xlane.f32.xlu0 %v1047_v63  ;;  %v1019_v1 = vpop.xlane.xlu0 %1018  ;;  %v1050_v9 = vsel %vm998_vm1, %v1416_v0, 0.0 }
 0x3a8   :  { %1417 = vpow2.f32 %v1039_v60  ;;  %v1041_v2 = vmul.f32 1.442695, %v1028_v61  ;;  %v1029_v3 = vsub.f32 %v992_v34, %v1019_v1 }
 0x3a9   :  { %v1022_v4 = vpop.xlane.xlu1 %1021 }
 0x3aa   :  { %1419 = vpow2.f32 %v1041_v2  ;;  %v1043_v5 = vmul.f32 1.442695, %v1029_v3  ;;  %v1030_v8 = vsub.f32 %v995_v37, %v1022_v4 }
 0x3ab   :  { %1051 = vadd.xlane.f32.xlu1 %v1050_v9 }
 0x3ac   :  { %1421 = vpow2.f32 %v1043_v5  ;;  %v1045_v10 = vmul.f32 1.442695, %v1030_v8 }
 0x3ae   :  { %1423 = vpow2.f32 %v1045_v10 }
 0x3b2   :  { %v1418_v11 = vpop.eup %1417 }
 0x3b3   :  { %v1059_v12 = vsel %vm998_vm1, %v1418_v11, 0.0 }
 0x3b4   :  { %v1420_v13 = vpop.eup %1419  ;;  %1060 = vadd.xlane.f32.xlu0 %v1059_v12 }
 0x3b5   :  { %v1062_v14 = vsel %vm998_vm1, %v1420_v13, 0.0 }
 0x3b6   :  { %v1422_v15 = vpop.eup %1421  ;;  %1063 = vadd.xlane.f32.xlu1 %v1062_v14 }
 0x3b7   :  { %v1065_v16 = vsel %vm998_vm1, %v1422_v15, 0.0 }
 0x3b8   :  { %v1424_v17 = vpop.eup %1423  ;;  %1066 = vadd.xlane.f32.xlu0 %v1065_v16 }
 0x3b9   :  { %v1068_v18 = vsel %vm998_vm1, %v1424_v17, 0.0 }
 0x3ba   :  { %1069 = vadd.xlane.f32.xlu1 %v1068_v18 }
 0x430   :  { %v1055_v19 = vpop.xlane.xlu0 %1054 }
 0x431   :  { %1425 = vrcp.f32 %v1055_v19 }
 0x434   :  { %v1058_v20 = vpop.xlane.xlu1 %1057  ;;  %v1049_v21 = vpop.xlane.xlu0 %1048 }
 0x435   :  { %1427 = vrcp.f32 %v1058_v20 }
 0x436   :  { %1429 = vrcp.f32 %v1049_v21 }
 0x438   :  { %v1052_v22 = vpop.xlane.xlu1 %1051 }
 0x439   :  { %1431 = vrcp.f32 %v1052_v22 }
 0x43b   :  { %v1426_v23 = vpop.eup %1425 }
 0x43c   :  { %v1081_v24 = vmul.f32 %v1426_v23, %v1410_v53 }
 0x43e   :  { %1089 = vst.msk [vmem:[%s1707_s7 + $0x10] sm:$0xff] %vm998_vm1, %v1081_v24 }
 0x43f   :  { %v1428_v25 = vpop.eup %1427 }
 0x440   :  { %v1430_v26 = vpop.eup %1429  ;;  %v1082_v27 = vmul.f32 %v1428_v25, %v1414_v58 }
 0x441   :  { %v1079_v28 = vmul.f32 %v1430_v26, %v1412_v55  ;;  %v1061_v29 = vpop.xlane.xlu0 %1060 }
 0x442   :  { %1090 = vst.msk [vmem:[%s1707_s7 + $0x18] sm:$0xff] %vm998_vm1, %v1082_v27  ;;  %1433 = vrcp.f32 %v1061_v29 }
 0x443   :  { %v1432_v30 = vpop.eup %1431  ;;  %1087 = vst.msk [vmem:[%s1707_s7] sm:$0xff] %vm998_vm1, %v1079_v28  ;;  %v1064_v31 = vpop.xlane.xlu1 %1063 }
 0x444   :  { %v1080_v32 = vmul.f32 %v1432_v30, %v1416_v0  ;;  %1435 = vrcp.f32 %v1064_v31 }
 0x445   :  { %v1067_v33 = vpop.xlane.xlu0 %1066 }
 0x446   :  { %1088 = vst.msk [vmem:[%s1707_s7 + $0x8] sm:$0xff] %vm998_vm1, %v1080_v32  ;;  %1437 = vrcp.f32 %v1067_v33 }
 0x447   :  { %v1070_v6 = vpop.xlane.xlu1 %1069 }
 0x448   :  { %1439 = vrcp.f32 %v1070_v6 }
 0x44c   :  { %v1434_v7 = vpop.eup %1433 }
 0x44d   :  { %v1083_v34 = vmul.f32 %v1434_v7, %v1418_v11 }
 0x44e   :  { %v1436_v35 = vpop.eup %1435 }
 0x44f   :  { %1091 = vst.msk [vmem:[%s1707_s7 + $0x20] sm:$0xff] %vm998_vm1, %v1083_v34  ;;  %v1084_v36 = vmul.f32 %v1436_v35, %v1420_v13 }
 0x450   :  { %v1438_v37 = vpop.eup %1437 }
 0x451   :  { %1092 = vst.msk [vmem:[%s1707_s7 + $0x28] sm:$0xff] %vm998_vm1, %v1084_v36  ;;  %v1085_v38 = vmul.f32 %v1438_v37, %v1422_v15 }
 0x452   :  { %v1440_v39 = vpop.eup %1439 }
 0x453   :  { %1093 = vst.msk [vmem:[%s1707_s7 + $0x30] sm:$0xff] %vm998_vm1, %v1085_v38  ;;  %v1086_v40 = vmul.f32 %v1440_v39, %v1424_v17 }
 0x455   :  { %1094 = vst.msk [vmem:[%s1707_s7 + $0x38] sm:$0xff] %vm998_vm1, %v1086_v40 }
 0x456   :  { %1099 = vsyncpa [#allocation3], 1 }
 0x457   :  { %1100 = vsyncpa [#allocation5], 1 }

</bundles_post_ra>
